<compile_context>
chip_gen: v6e
topology: v6e:2x2x1
jax: 0.10.0
libtpu: 0.0.40
codegen_flags: <defaults>
</compile_context>

<pallas_src>
import functools

import jax
import jax.numpy as jnp
from jax.experimental import pallas as pl
from jax.experimental.pallas import tpu as pltpu

LANES = 128  # packed-buffer lane width (full vreg lane dim)


def gcrn_lstm_kernel(x_ref, lhat_ref, hc_ref, wbig_ref, p_ref,
                     out_ref, h_s, hs_s, cs_s, *, K, F, Din, Dout):
    t = pl.program_id(0)
    last = pl.num_programs(0) - 1

    # ---- unpack the single small-parameter buffer (static slices) ----------
    P = p_ref[...]                                        # (R, 128) f32
    r = 0
    we = P[r:r + Din, :F];                 r += Din        # emb weight (Din, F)
    be = P[r, :F];                         r += 1          # emb bias   (F,)
    wci = P[r, :F]                                         # peephole w_c_i
    wcf = P[r + 1, :F]                                     # peephole w_c_f
    wco = P[r + 2, :F];                    r += 3          # peephole w_c_o
    bias = P[r, :4 * F];                   r += 1          # fused gate bias (4F,)
    wr = P[r:r + F, :LANES - 2 * F];       r += F          # readout W (zero-padded)
    br = P[r, :LANES - 2 * F]                              # readout b (zero-padded)

    L = lhat_ref[...]                                      # (N, N) bf16 scaled Laplacian

    # ---- t == 0: load carried state, compute the embedding once ------------
    @pl.when(t == 0)
    def _():
        hc = hc_ref[...]                                   # (N, 128) packed [H | C | 0]
        hs_s[...] = hc[:, :F]
        cs_s[...] = hc[:, F:2 * F]
        X = jnp.dot(x_ref[...].astype(jnp.bfloat16), we.astype(jnp.bfloat16),
                    preferred_element_type=jnp.float32) + be
        h_s[...] = X                                       # h = emb(x)

    h = h_s[...]                                           # conv input this step
    Hp = hs_s[...]
    Cp = cs_s[...]

    # Chebyshev basis T_k(L_hat) applied ONCE to the concatenated [h | Hp]
    # operand; shared by all 4 gates (L only acts on the node axis).
    XH0 = jnp.concatenate([h, Hp], axis=1)                 # (N, 2F), f32, T_0
    blocks = [XH0]
    if K > 1:
        XH1 = jnp.dot(L, XH0.astype(jnp.bfloat16),
                      preferred_element_type=jnp.float32)  # T_1
        blocks.append(XH1)
        for _ in range(2, K):
            XH2 = 2.0 * jnp.dot(L, XH1.astype(jnp.bfloat16),
                                preferred_element_type=jnp.float32) - XH0
            blocks.append(XH2)
            XH0, XH1 = XH1, XH2
    lhs = jnp.concatenate(blocks, axis=1)                  # (N, 2*K*F)

    # One fused MXU matmul for all gates / K orders / {X, H} paths, bf16
    # operands with f32 accumulation; fused (bx + bh + b_gate) bias added once.
    pre = jnp.dot(lhs.astype(jnp.bfloat16), wbig_ref[...],
                  preferred_element_type=jnp.float32) + bias   # (N, 4F)

    # GConvLSTM cell (torch_geometric_temporal semantics), gate order [i,f,c,o]
    I = jax.nn.sigmoid(pre[:, 0 * F:1 * F] + wci * Cp)
    Fg = jax.nn.sigmoid(pre[:, 1 * F:2 * F] + wcf * Cp)
    T = jnp.tanh(pre[:, 2 * F:3 * F])
    Cn = Fg * Cp + I * T
    O = jax.nn.sigmoid(pre[:, 3 * F:4 * F] + wco * Cn)
    Hn = O * jnp.tanh(Cn)
    h_act = jnp.tanh(Hn)                                   # h = activ_fun(H)

    hs_s[...] = Hn
    cs_s[...] = Cn
    h_s[...] = h_act

    # ---- last step: readout + single lane-dense packed store ---------------
    @pl.when(t == last)
    def _():
        y = jnp.dot(h_act.astype(jnp.bfloat16), wr.astype(jnp.bfloat16),
                    preferred_element_type=jnp.float32) + br   # (N, 128-2F), padded
        out_ref[...] = jnp.concatenate([Hn, Cn, y], axis=1)    # (N, 128)


def build_scaled_laplacian(edge_index, num_nodes):
    """Dense L_hat matching get_laplacian(normalization=None) + ChebConv.__norm__."""
    # TODO(synk): only normalization=None (the GCRN_LSTM_Model default) is
    # implemented; 'sym'/'rw' normalization would need D^-1/2 scaling here.
    src, dst = edge_index[0], edge_index[1]
    w = jnp.ones((edge_index.shape[1],), jnp.float32)
    A = jnp.zeros((num_nodes, num_nodes), jnp.float32).at[src, dst].add(w)
    deg = jnp.zeros((num_nodes,), jnp.float32).at[src].add(w)
    L = jnp.diag(deg) - A
    # lambda_max = edge_weight.max() of the unnormalized Laplacian edge weights
    # (= max degree for positive edge weights); guard against an empty graph.
    lam = jnp.maximum(deg.max(), -1.0)
    lam = jnp.where(lam > 0.0, lam, 2.0)
    return (2.0 / lam) * L - jnp.eye(num_nodes, dtype=jnp.float32)


@functools.partial(jax.jit, static_argnames=("K", "delta_t"))
def gcrn_lstm_forward(x, lhat, hc_prev, params, K=2, delta_t=1):
    N, Din = x.shape
    F = params["we"].shape[1]
    Dout = params["wr"].shape[1]
    assert 4 * F <= LANES, "gate block must fit in 128 lanes"
    assert 2 * F + Dout <= LANES, "packed [H|C|y] output must fit in 128 lanes"

    # --- trace-time weight fusion (wrapper-side XLA, not in the kernel) -----
    # wx/wh: (4 gates, K, F_in, F_out) -> one (2*K*F, 4*F) bf16 gate weight,
    # rows ordered (k, path in {X,H}, F_in) to match the kernel's lhs layout.
    w_all = jnp.stack([params["wx"], params["wh"]], axis=0)        # (2,4,K,F,F)
    w_big = jnp.transpose(w_all, (2, 0, 3, 1, 4)).reshape(2 * K * F, 4 * F)
    w_big = w_big.astype(jnp.bfloat16)       # bf16 MXU operands, f32 accumulate

    bias_fused = (params["bx"] + params["bh"] + params["bg"]).reshape(4 * F)

    # All small parameters packed into ONE lane-padded f32 buffer (one DMA).
    rows_raw = Din + 5 + F + 1
    R = ((rows_raw + 7) // 8) * 8
    P = jnp.zeros((R, LANES), jnp.float32)
    r = 0
    P = P.at[r:r + Din, :F].set(params["we"]);             r += Din
    P = P.at[r, :F].set(params["be"].reshape(F));          r += 1
    P = P.at[r:r + 3, :F].set(params["wc"]);               r += 3
    P = P.at[r, :4 * F].set(bias_fused);                   r += 1
    P = P.at[r:r + F, :Dout].set(params["wr"]);            r += F
    P = P.at[r, :Dout].set(params["br"].reshape(Dout))

    # Packed (N,128) state input [H | C | 0...]; aliased with the packed output.
    hc_packed = jnp.zeros((N, LANES), jnp.float32)
    hc_packed = hc_packed.at[:, :F].set(hc_prev[0]).at[:, F:2 * F].set(hc_prev[1])

    lhat_b = lhat.astype(jnp.bfloat16)       # |L_hat| <= ~1; bf16 is plenty

    kernel = functools.partial(gcrn_lstm_kernel, K=K, F=F, Din=Din, Dout=Dout)
    out = pl.pallas_call(
        kernel,
        out_shape=jax.ShapeDtypeStruct((N, LANES), jnp.float32),
        grid=(delta_t,),
        in_specs=[
            pl.BlockSpec((N, Din), lambda t: (0, 0)),          # x
            pl.BlockSpec((N, N), lambda t: (0, 0)),            # L_hat (bf16)
            pl.BlockSpec((N, LANES), lambda t: (0, 0)),        # packed [H|C] state
            pl.BlockSpec((2 * K * F, 4 * F), lambda t: (0, 0)),  # fused gate weight
            pl.BlockSpec((R, LANES), lambda t: (0, 0)),        # packed small params
        ],
        out_specs=pl.BlockSpec((N, LANES), lambda t: (0, 0)),  # packed [Hn|Cn|y]
        scratch_shapes=[pltpu.VMEM((N, F), jnp.float32),       # h  (conv input)
                        pltpu.VMEM((N, F), jnp.float32),       # H  carried state
                        pltpu.VMEM((N, F), jnp.float32)],      # C  carried state
        input_output_aliases={2: 0},                           # hc_packed -> out
        compiler_params=pltpu.CompilerParams(
            dimension_semantics=("arbitrary",)),               # time axis is sequential
    )(x, lhat_b, hc_packed, w_big, P)

    # Cheap XLA slices in the wrapper; model returns (y, torch.stack((H, C))).
    y = out[:, 2 * F:2 * F + Dout]
    hc = jnp.stack([out[:, :F], out[:, F:2 * F]])
    return y, hc


def ref_forward(x, lhat, prev_H, prev_C, p, K=2, delta_t=1):
    """Pure-JAX f32 reference of the same forward pass (correctness check)."""
    def cheb(inp, W, b):
        Tx0 = inp
        out = Tx0 @ W[0]
        if K > 1:
            Tx1 = lhat @ Tx0
            out = out + Tx1 @ W[1]
            for k in range(2, K):
                Tx2 = 2.0 * (lhat @ Tx1) - Tx0
                out = out + Tx2 @ W[k]
                Tx0, Tx1 = Tx1, Tx2
        return out + b

    h = x @ p["we"] + p["be"][0]
    H, C = prev_H, prev_C
    for _ in range(delta_t):
        def gate(g):
            return cheb(h, p["wx"][g], p["bx"][g]) + cheb(H, p["wh"][g], p["bh"][g])
        I = jax.nn.sigmoid(gate(0) + p["wc"][0] * C + p["bg"][0])
        Fg = jax.nn.sigmoid(gate(1) + p["wc"][1] * C + p["bg"][1])
        T = jnp.tanh(gate(2) + p["bg"][2])
        Cn = Fg * C + I * T
        O = jax.nn.sigmoid(gate(3) + p["wc"][2] * Cn + p["bg"][3])
        Hn = O * jnp.tanh(Cn)
        h = jnp.tanh(Hn)
        H, C = Hn, Cn
    y = h @ p["wr"] + p["br"][0]
    return y, jnp.stack((H, C))


if __name__ == "__main__":
    N = 16      # number of graph nodes
    Din = 4     # input_dim
    F = 32      # hidden_dim (= self.inp = GConvLSTM in/out channels)
    Dout = 8    # output_dim
    K = 2       # Chebyshev order

    key = jax.random.PRNGKey(0)
    keys = jax.random.split(key, 13)

    x = jax.random.normal(keys[0], (N, Din), jnp.float32)

    # Ring graph, both directions (edge_index shape (2, 2N))
    idx = jnp.arange(N, dtype=jnp.int32)
    src = jnp.concatenate([idx, (idx + 1) % N])
    dst = jnp.concatenate([(idx + 1) % N, idx])
    edge_index = jnp.stack([src, dst])

    def init(k, shape, scale=0.1):
        return scale * jax.random.normal(k, shape, jnp.float32)

    # Deterministic synthetic parameters (shapes from the module __init__):
    params = {
        "we": init(keys[1], (Din, F)),      # emb: Linear(input_dim, hidden_dim) (pre-transposed)
        "be": init(keys[2], (1, F)),
        "wx": init(keys[3], (4, K, F, F)),  # ChebConv weights on X, gates [i, f, c, o]
        "bx": init(keys[4], (4, F)),        # ChebConv biases on X
        "wh": init(keys[5], (4, K, F, F)),  # ChebConv weights on H
        "bh": init(keys[6], (4, F)),        # ChebConv biases on H
        "wc": init(keys[7], (3, F)),        # w_c_i, w_c_f, w_c_o (peephole, shape (1,F) in torch)
        "bg": init(keys[8], (4, F)),        # b_i, b_f, b_c, b_o
        "wr": init(keys[9], (F, Dout)),     # readout: Linear(inp, output_dim) (pre-transposed)
        "br": init(keys[10], (1, Dout)),
    }

    # prev_h = (prev_H, prev_C) in stacked (2, N, F) layout (matches model output).
    prev_H = init(keys[11], (N, F), scale=0.5)
    prev_C = init(keys[12], (N, F), scale=0.5)
    hc_prev = jnp.stack([prev_H, prev_C])

    lhat = build_scaled_laplacian(edge_index, N)

    # --- default model path: iterate=False => exactly one GConvLSTM step ----
    y, hc = gcrn_lstm_forward(x, lhat, hc_prev, params, K=K, delta_t=1)
    jax.block_until_ready((y, hc))
    y_ref, hc_ref = ref_forward(x, lhat, prev_H, prev_C, params, K=K, delta_t=1)
    assert jnp.allclose(y, y_ref, atol=1e-2, rtol=1e-2), "readout mismatch (T=1)"
    assert jnp.allclose(hc, hc_ref, atol=1e-2, rtol=1e-2), "(H, C) mismatch (T=1)"

    # --- iterate=True path: delta_t recurrent steps inside ONE kernel launch,
    #     weights VMEM-resident, H/C carried in VMEM scratch across the grid.
    T_STEPS = 4
    y4, hc4 = gcrn_lstm_forward(x, lhat, hc_prev, params, K=K, delta_t=T_STEPS)
    jax.block_until_ready((y4, hc4))
    y4_ref, hc4_ref = ref_forward(x, lhat, prev_H, prev_C, params, K=K, delta_t=T_STEPS)
    # bf16 MXU operands compound slightly over T steps -> looser tolerance here.
    assert jnp.allclose(y4, y4_ref, atol=3e-2, rtol=3e-2), "readout mismatch (T=4)"
    assert jnp.allclose(hc4, hc4_ref, atol=3e-2, rtol=3e-2), "(H, C) mismatch (T=4)"

    print("KERNEL_OK")
</pallas_src>

<mosaic_0001>
module attributes {stable_mosaic.version = 11 : i64} {
  func.func @gcrn_lstm_kernel(%arg0: i32, %arg1: memref<16x4xf32, #tpu.memory_space<vmem>>, %arg2: memref<16x16xbf16, #tpu.memory_space<vmem>>, %arg3: memref<16x128xf32, #tpu.memory_space<vmem>>, %arg4: memref<128x128xbf16, #tpu.memory_space<vmem>>, %arg5: memref<48x128xf32, #tpu.memory_space<vmem>>, %arg6: memref<16x128xf32, #tpu.memory_space<vmem>>, %arg7: memref<16x32xf32, #tpu.memory_space<vmem>>, %arg8: memref<16x32xf32, #tpu.memory_space<vmem>>, %arg9: memref<16x32xf32, #tpu.memory_space<vmem>>) attributes {dimension_semantics = [#tpu.dimension_semantics<arbitrary>], iteration_bounds = array<i64: 1>, scalar_prefetch = 0 : i64, scratch_operands = 3 : i64, tpu.core_type = #tpu.core_type<tc>, window_params = [{pipeline_mode = #tpu.pipeline_mode<synchronous>, transform_indices = @transform_0, window_bounds = array<i64: 16, 4>}, {pipeline_mode = #tpu.pipeline_mode<synchronous>, transform_indices = @transform_1, window_bounds = array<i64: 16, 16>}, {pipeline_mode = #tpu.pipeline_mode<synchronous>, transform_indices = @transform_2, window_bounds = array<i64: 16, 128>}, {pipeline_mode = #tpu.pipeline_mode<synchronous>, transform_indices = @transform_3, window_bounds = array<i64: 128, 128>}, {pipeline_mode = #tpu.pipeline_mode<synchronous>, transform_indices = @transform_4, window_bounds = array<i64: 48, 128>}, {pipeline_mode = #tpu.pipeline_mode<synchronous>, transform_indices = @transform_5, window_bounds = array<i64: 16, 128>}]} {
    %c0 = arith.constant 0 : index
    %c0_0 = arith.constant 0 : index
    %0 = vector.load %arg5[%c0, %c0_0] : memref<48x128xf32, #tpu.memory_space<vmem>>, vector<48x128xf32>
    %1 = vector.extract_strided_slice %0 {offsets = [0, 0], sizes = [4, 32], strides = [1, 1]} : vector<48x128xf32> to vector<4x32xf32>
    %2 = vector.extract_strided_slice %0 {offsets = [4, 0], sizes = [1, 32], strides = [1, 1]} : vector<48x128xf32> to vector<1x32xf32>
    %3 = vector.shape_cast %2 : vector<1x32xf32> to vector<32xf32>
    %4 = vector.extract_strided_slice %0 {offsets = [5, 0], sizes = [1, 32], strides = [1, 1]} : vector<48x128xf32> to vector<1x32xf32>
    %5 = vector.shape_cast %4 : vector<1x32xf32> to vector<32xf32>
    %6 = vector.extract_strided_slice %0 {offsets = [6, 0], sizes = [1, 32], strides = [1, 1]} : vector<48x128xf32> to vector<1x32xf32>
    %7 = vector.shape_cast %6 : vector<1x32xf32> to vector<32xf32>
    %8 = vector.extract_strided_slice %0 {offsets = [7, 0], sizes = [1, 32], strides = [1, 1]} : vector<48x128xf32> to vector<1x32xf32>
    %9 = vector.shape_cast %8 : vector<1x32xf32> to vector<32xf32>
    %10 = vector.extract_strided_slice %0 {offsets = [8, 0], sizes = [1, 128], strides = [1, 1]} : vector<48x128xf32> to vector<1x128xf32>
    %11 = vector.shape_cast %10 : vector<1x128xf32> to vector<128xf32>
    %12 = vector.extract_strided_slice %0 {offsets = [9, 0], sizes = [32, 64], strides = [1, 1]} : vector<48x128xf32> to vector<32x64xf32>
    %13 = vector.extract_strided_slice %0 {offsets = [41, 0], sizes = [1, 64], strides = [1, 1]} : vector<48x128xf32> to vector<1x64xf32>
    %14 = vector.shape_cast %13 : vector<1x64xf32> to vector<64xf32>
    %c0_1 = arith.constant 0 : index
    %c0_2 = arith.constant 0 : index
    %15 = vector.load %arg2[%c0_1, %c0_2] : memref<16x16xbf16, #tpu.memory_space<vmem>>, vector<16x16xbf16>
    %c0_i32 = arith.constant 0 : i32
    %16 = arith.cmpi eq, %arg0, %c0_i32 : i32
    %17 = arith.extui %16 : i1 to i32
    %c0_i32_3 = arith.constant 0 : i32
    %18 = arith.cmpi ne, %17, %c0_i32_3 : i32
    scf.if %18 {
      %c0_24 = arith.constant 0 : index
      %c0_25 = arith.constant 0 : index
      %76 = vector.load %arg3[%c0_24, %c0_25] : memref<16x128xf32, #tpu.memory_space<vmem>>, vector<16x128xf32>
      %77 = vector.extract_strided_slice %76 {offsets = [0, 0], sizes = [16, 32], strides = [1, 1]} : vector<16x128xf32> to vector<16x32xf32>
      %c0_26 = arith.constant 0 : index
      %c0_27 = arith.constant 0 : index
      %78 = vector.load %arg8[%c0_26, %c0_27] : memref<16x32xf32, #tpu.memory_space<vmem>>, vector<16x32xf32>
      tpu.vector_store %arg8[%c0_26, %c0_27], %77 {strides = array<i32>} : memref<16x32xf32, #tpu.memory_space<vmem>>, vector<16x32xf32>,
      %79 = vector.extract_strided_slice %76 {offsets = [0, 32], sizes = [16, 32], strides = [1, 1]} : vector<16x128xf32> to vector<16x32xf32>
      %c0_28 = arith.constant 0 : index
      %c0_29 = arith.constant 0 : index
      %80 = vector.load %arg9[%c0_28, %c0_29] : memref<16x32xf32, #tpu.memory_space<vmem>>, vector<16x32xf32>
      tpu.vector_store %arg9[%c0_28, %c0_29], %79 {strides = array<i32>} : memref<16x32xf32, #tpu.memory_space<vmem>>, vector<16x32xf32>,
      %c0_30 = arith.constant 0 : index
      %c0_31 = arith.constant 0 : index
      %81 = vector.load %arg1[%c0_30, %c0_31] : memref<16x4xf32, #tpu.memory_space<vmem>>, vector<16x4xf32>
      %82 = arith.truncf %81 : vector<16x4xf32> to vector<16x4xbf16>
      %83 = arith.truncf %1 : vector<4x32xf32> to vector<4x32xbf16>
      %cst_32 = arith.constant dense<0.000000e+00> : vector<16x32xf32>
      %84 = tpu.matmul %82, %83, %cst_32 {dimension_numbers = #tpu.dot_dimension_numbers<[1], [0], [0], [1], [0, 0, 1, 1], [], []>} : vector<16x4xbf16>, vector<4x32xbf16>, vector<16x32xf32> -> vector<16x32xf32>
      %85 = vector.shape_cast %3 : vector<32xf32> to vector<1x32xf32>
      %86 = vector.broadcast %85 : vector<1x32xf32> to vector<16x32xf32>
      %87 = arith.addf %84, %86 : vector<16x32xf32>
      %c0_33 = arith.constant 0 : index
      %c0_34 = arith.constant 0 : index
      %88 = vector.load %arg7[%c0_33, %c0_34] : memref<16x32xf32, #tpu.memory_space<vmem>>, vector<16x32xf32>
      tpu.vector_store %arg7[%c0_33, %c0_34], %87 {strides = array<i32>} : memref<16x32xf32, #tpu.memory_space<vmem>>, vector<16x32xf32>,
    } else {
    }
    %c0_4 = arith.constant 0 : index
    %c0_5 = arith.constant 0 : index
    %19 = vector.load %arg7[%c0_4, %c0_5] : memref<16x32xf32, #tpu.memory_space<vmem>>, vector<16x32xf32>
    %c0_6 = arith.constant 0 : index
    %c0_7 = arith.constant 0 : index
    %20 = vector.load %arg8[%c0_6, %c0_7] : memref<16x32xf32, #tpu.memory_space<vmem>>, vector<16x32xf32>
    %c0_8 = arith.constant 0 : index
    %c0_9 = arith.constant 0 : index
    %21 = vector.load %arg9[%c0_8, %c0_9] : memref<16x32xf32, #tpu.memory_space<vmem>>, vector<16x32xf32>
    %22 = tpu.concatenate %19, %20 in 1 : vector<16x32xf32>, vector<16x32xf32> -> vector<16x64xf32>
    %23 = arith.truncf %22 : vector<16x64xf32> to vector<16x64xbf16>
    %cst = arith.constant dense<0.000000e+00> : vector<16x64xf32>
    %24 = tpu.matmul %15, %23, %cst {dimension_numbers = #tpu.dot_dimension_numbers<[1], [0], [0], [1], [0, 0, 1, 1], [], []>} : vector<16x16xbf16>, vector<16x64xbf16>, vector<16x64xf32> -> vector<16x64xf32>
    %25 = tpu.concatenate %22, %24 in 1 : vector<16x64xf32>, vector<16x64xf32> -> vector<16x128xf32>
    %26 = arith.truncf %25 : vector<16x128xf32> to vector<16x128xbf16>
    %c0_10 = arith.constant 0 : index
    %c0_11 = arith.constant 0 : index
    %27 = vector.load %arg4[%c0_10, %c0_11] : memref<128x128xbf16, #tpu.memory_space<vmem>>, vector<128x128xbf16>
    %cst_12 = arith.constant dense<0.000000e+00> : vector<16x128xf32>
    %28 = tpu.matmul %26, %27, %cst_12 {dimension_numbers = #tpu.dot_dimension_numbers<[1], [0], [0], [1], [0, 0, 1, 1], [], []>} : vector<16x128xbf16>, vector<128x128xbf16>, vector<16x128xf32> -> vector<16x128xf32>
    %29 = vector.shape_cast %11 : vector<128xf32> to vector<1x128xf32>
    %30 = vector.broadcast %29 : vector<1x128xf32> to vector<16x128xf32>
    %31 = arith.addf %28, %30 : vector<16x128xf32>
    %32 = vector.extract_strided_slice %31 {offsets = [0, 0], sizes = [16, 32], strides = [1, 1]} : vector<16x128xf32> to vector<16x32xf32>
    %33 = vector.shape_cast %5 : vector<32xf32> to vector<1x32xf32>
    %34 = vector.broadcast %33 : vector<1x32xf32> to vector<16x32xf32>
    %35 = arith.mulf %34, %21 : vector<16x32xf32>
    %36 = arith.addf %32, %35 : vector<16x32xf32>
    %37 = arith.negf %36 : vector<16x32xf32>
    %38 = math.exp %37 : vector<16x32xf32>
    %cst_13 = arith.constant 1.000000e+00 : f32
    %39 = vector.broadcast %cst_13 : f32 to vector<16x32xf32>
    %40 = arith.addf %39, %38 : vector<16x32xf32>
    %41 = arith.divf %39, %40 : vector<16x32xf32>
    %42 = vector.extract_strided_slice %31 {offsets = [0, 32], sizes = [16, 32], strides = [1, 1]} : vector<16x128xf32> to vector<16x32xf32>
    %43 = vector.shape_cast %7 : vector<32xf32> to vector<1x32xf32>
    %44 = vector.broadcast %43 : vector<1x32xf32> to vector<16x32xf32>
    %45 = arith.mulf %44, %21 : vector<16x32xf32>
    %46 = arith.addf %42, %45 : vector<16x32xf32>
    %47 = arith.negf %46 : vector<16x32xf32>
    %48 = math.exp %47 : vector<16x32xf32>
    %cst_14 = arith.constant 1.000000e+00 : f32
    %49 = vector.broadcast %cst_14 : f32 to vector<16x32xf32>
    %50 = arith.addf %49, %48 : vector<16x32xf32>
    %51 = arith.divf %49, %50 : vector<16x32xf32>
    %52 = vector.extract_strided_slice %31 {offsets = [0, 64], sizes = [16, 32], strides = [1, 1]} : vector<16x128xf32> to vector<16x32xf32>
    %53 = math.tanh %52 : vector<16x32xf32>
    %54 = arith.mulf %51, %21 : vector<16x32xf32>
    %55 = arith.mulf %41, %53 : vector<16x32xf32>
    %56 = arith.addf %54, %55 : vector<16x32xf32>
    %57 = vector.extract_strided_slice %31 {offsets = [0, 96], sizes = [16, 32], strides = [1, 1]} : vector<16x128xf32> to vector<16x32xf32>
    %58 = vector.shape_cast %9 : vector<32xf32> to vector<1x32xf32>
    %59 = vector.broadcast %58 : vector<1x32xf32> to vector<16x32xf32>
    %60 = arith.mulf %59, %56 : vector<16x32xf32>
    %61 = arith.addf %57, %60 : vector<16x32xf32>
    %62 = arith.negf %61 : vector<16x32xf32>
    %63 = math.exp %62 : vector<16x32xf32>
    %cst_15 = arith.constant 1.000000e+00 : f32
    %64 = vector.broadcast %cst_15 : f32 to vector<16x32xf32>
    %65 = arith.addf %64, %63 : vector<16x32xf32>
    %66 = arith.divf %64, %65 : vector<16x32xf32>
    %67 = math.tanh %56 : vector<16x32xf32>
    %68 = arith.mulf %66, %67 : vector<16x32xf32>
    %69 = math.tanh %68 : vector<16x32xf32>
    %c0_16 = arith.constant 0 : index
    %c0_17 = arith.constant 0 : index
    %70 = vector.load %arg8[%c0_16, %c0_17] : memref<16x32xf32, #tpu.memory_space<vmem>>, vector<16x32xf32>
    tpu.vector_store %arg8[%c0_16, %c0_17], %68 {strides = array<i32>} : memref<16x32xf32, #tpu.memory_space<vmem>>, vector<16x32xf32>,
    %c0_18 = arith.constant 0 : index
    %c0_19 = arith.constant 0 : index
    %71 = vector.load %arg9[%c0_18, %c0_19] : memref<16x32xf32, #tpu.memory_space<vmem>>, vector<16x32xf32>
    tpu.vector_store %arg9[%c0_18, %c0_19], %56 {strides = array<i32>} : memref<16x32xf32, #tpu.memory_space<vmem>>, vector<16x32xf32>,
    %c0_20 = arith.constant 0 : index
    %c0_21 = arith.constant 0 : index
    %72 = vector.load %arg7[%c0_20, %c0_21] : memref<16x32xf32, #tpu.memory_space<vmem>>, vector<16x32xf32>
    tpu.vector_store %arg7[%c0_20, %c0_21], %69 {strides = array<i32>} : memref<16x32xf32, #tpu.memory_space<vmem>>, vector<16x32xf32>,
    %c0_i32_22 = arith.constant 0 : i32
    %73 = arith.cmpi eq, %arg0, %c0_i32_22 : i32
    %74 = arith.extui %73 : i1 to i32
    %c0_i32_23 = arith.constant 0 : i32
    %75 = arith.cmpi ne, %74, %c0_i32_23 : i32
    scf.if %75 {
      %76 = arith.truncf %69 : vector<16x32xf32> to vector<16x32xbf16>
      %77 = arith.truncf %12 : vector<32x64xf32> to vector<32x64xbf16>
      %cst_24 = arith.constant dense<0.000000e+00> : vector<16x64xf32>
      %78 = tpu.matmul %76, %77, %cst_24 {dimension_numbers = #tpu.dot_dimension_numbers<[1], [0], [0], [1], [0, 0, 1, 1], [], []>} : vector<16x32xbf16>, vector<32x64xbf16>, vector<16x64xf32> -> vector<16x64xf32>
      %79 = vector.shape_cast %14 : vector<64xf32> to vector<1x64xf32>
      %80 = vector.broadcast %79 : vector<1x64xf32> to vector<16x64xf32>
      %81 = arith.addf %78, %80 : vector<16x64xf32>
      %82 = tpu.concatenate %68, %56, %81 in 1 : vector<16x32xf32>, vector<16x32xf32>, vector<16x64xf32> -> vector<16x128xf32>
      %c0_25 = arith.constant 0 : index
      %c0_26 = arith.constant 0 : index
      %83 = vector.load %arg6[%c0_25, %c0_26] : memref<16x128xf32, #tpu.memory_space<vmem>>, vector<16x128xf32>
      tpu.vector_store %arg6[%c0_25, %c0_26], %82 {strides = array<i32>} : memref<16x128xf32, #tpu.memory_space<vmem>>, vector<16x128xf32>,
    } else {
    }
    return
  }
  func.func @transform_0(%arg0: i32) -> (i32, i32) {
    %c0_i32 = arith.constant 0 : i32
    %c0_i32_0 = arith.constant 0 : i32
    %c0_i32_1 = arith.constant 0 : i32
    return %c0_i32, %c0_i32_0 : i32, i32
  }
  func.func @transform_1(%arg0: i32) -> (i32, i32) {
    %c0_i32 = arith.constant 0 : i32
    %c0_i32_0 = arith.constant 0 : i32
    %c0_i32_1 = arith.constant 0 : i32
    return %c0_i32, %c0_i32_0 : i32, i32
  }
  func.func @transform_2(%arg0: i32) -> (i32, i32) {
    %c0_i32 = arith.constant 0 : i32
    %c0_i32_0 = arith.constant 0 : i32
    %c0_i32_1 = arith.constant 0 : i32
    return %c0_i32, %c0_i32_0 : i32, i32
  }
  func.func @transform_3(%arg0: i32) -> (i32, i32) {
    %c0_i32 = arith.constant 0 : i32
    %c0_i32_0 = arith.constant 0 : i32
    %c0_i32_1 = arith.constant 0 : i32
    return %c0_i32, %c0_i32_0 : i32, i32
  }
  func.func @transform_4(%arg0: i32) -> (i32, i32) {
    %c0_i32 = arith.constant 0 : i32
    %c0_i32_0 = arith.constant 0 : i32
    %c0_i32_1 = arith.constant 0 : i32
    return %c0_i32, %c0_i32_0 : i32, i32
  }
  func.func @transform_5(%arg0: i32) -> (i32, i32) {
    %c0_i32 = arith.constant 0 : i32
    %c0_i32_0 = arith.constant 0 : i32
    %c0_i32_1 = arith.constant 0 : i32
    return %c0_i32, %c0_i32_0 : i32, i32
  }
}

</mosaic_0001>

<bundles_post_ra>
// kernel: gcrn_lstm_forward.1
= control target key start
LH: loop header
LB: loop body
LE: loop exit
PB: predicated region body
PF: predicated region fallthrough
CT: control target
= control target key end

     0   :  { %v681_v0 = vmov 0.0   ;;  %vm60_vm0 = vcmask 1041408   ;;  %vm682_vm1 = vmmov 0   ;;  %vm35_vm2 = vcmask 261120   ;;  %s684_s19 = smov 96   ;;  %s685_s20 = smov 64   ;;  %s895_s4 = inlined_call_operand.vmem [shape: f32[48,128], index: 4, kind: input, shape index: {}]   ;;  %s896_s0 = inlined_call_operand.vmem [shape: f32[16,4], index: 0, kind: input, shape index: {}]   ;;  %s897_s2 = inlined_call_operand.vmem [shape: f32[16,128], index: 2, kind: input, shape index: {}, may-alias: {2,5}]   ;;  %s898_s1 = inlined_call_operand.vmem [shape: bf16[16,16], index: 1, kind: input, shape index: {}]   ;;  %s899_s3 = inlined_call_operand.vmem [shape: bf16[128,128], index: 3, kind: input, shape index: {}]   ;;  %s900_s5 = inlined_call_operand.vmem [shape: f32[16,128], index: 5, kind: output, shape index: {}, may-alias: {2,5}]  }
   0x1   :  { %581 = vmatprep.subr.bf16.mxu1 %v681_v0  ;;  %v720_v1 = vld [vmem:[%s895_s4] sm:$0xff]  ;;  %583 = vmatprep.mubr.msk.bf16.mxu1 %vm682_vm1, %v681_v0  ;;  %v49_v3 = vld [vmem:[%s896_s0 + $0x8] sm:$0xff]  ;;  %vm56_vm3 = vcmask 31744   ;;  %v52_v12 = vlaneseq  ;;  %vm130_vm4 = vcmask 130048   ;;  %v637_v31 = vld [vmem:[%s899_s3 + $0x38] sm:$0xff]   ;;  %vm183_vm5 = vcmask 523264  }
   0x2   :  { %v48_v2 = vld [vmem:[%s896_s0] sm:$0xff]  ;;  %v51_v4 = vpack.c.bf16 %v720_v1, %v720_v1  ;;  %v740_v6 = vld [vmem:[%s897_s2 + $0x8] sm:$0xff]  ;;  %593 = vmatprep.subr.bf16.mxu0 %v681_v0  ;;  %609 = vmatprep.mubr.msk.bf16.mxu0 %vm682_vm1, %v681_v0  ;;  %s683_s0 = smov 32   ;;  %v638_v32 = vld [vmem:[%s899_s3 + $0x30] sm:$0xff]   ;;  %vm462_vm6 = vsmask.f32 7424 }
   0x3   :  { %v735_v5 = vld [vmem:[%s897_s2] sm:$0xff]  ;;  %37 = vst.msk [vmem:[#allocation3 + $0x8] sm:$0xff] %vm35_vm2, %v740_v6  ;;  %v50_v8 = vpack.c.bf16 %v49_v3, %v48_v2  ;;  %v753_v13 = vshrl.u32 %v52_v12, 7  ;;  %594 = vmatpush3.bf16.msra.mxu0 %v637_v31  ;;  %v639_v33 = vld [vmem:[%s899_s3 + $0x28] sm:$0xff]   ;;  %v641_v35 = vld [vmem:[%s899_s3 + $0x18] sm:$0xff]  }
   0x4   :  { %36 = vst.msk [vmem:[#allocation3] sm:$0xff] %vm35_vm2, %v735_v5  ;;  %v62_v7 = vsel %vm60_vm0, %v51_v4, 0  ;;  %v636_v30 = vld [vmem:[%s898_s1] sm:$0xff]   ;;  %595 = vmatprep.subr.bf16.mxu0 %v681_v0  ;;  %v642_v36 = vld [vmem:[%s899_s3 + $0x10] sm:$0xff]   ;;  %v643_v37 = vld [vmem:[%s899_s3 + $0x8] sm:$0xff]   ;;  %40 = vrot.lane.b32.xlu1 %v735_v5, %s684_s19 }
   0x5   :  { %582 = vmatpush3.bf16.msra.mxu1 %v62_v7  ;;  %v54_v14 = vsub.s32 4, %v753_v13  ;;  %v640_v34 = vld [vmem:[%s899_s3 + $0x20] sm:$0xff]   ;;  %v205_v52 = vsub.s32 0, %v753_v13  ;;  %v811_v53 = vld [vmem:[%s895_s4 + $0x8] sm:$0xff]  ;;  %v318_v61 = vsub.s32 6, %v753_v13  ;;  %v298_v7 = vsub.s32 5, %v753_v13 }
   0x6   :  { %587 = vmatprep.subr.bf16.mxu1 %v681_v0  ;;  %v644_v38 = vld [vmem:[%s899_s3] sm:$0xff]  }
   0x7   :  { %v55_v15 = vrot.slane %v720_v1, %v54_v14  ;;  %596 = vmatpush3.bf16.msra.mxu0 %v638_v32  ;;  %v206_v54 = vrot.slane %v811_v53, %v205_v52  ;;  %v319_v62 = vrot.slane %v720_v1, %v318_v61 }
   0x8   :  { %584 = vmatmul.mubr.msk.bf16.vlgmr.msra.gmra.mxu1 %vm56_vm3, %v50_v8  ;;  %597 = vmatprep.subr.bf16.mxu0 %v681_v0  ;;  %v299_v8 = vrot.slane %v720_v1, %v298_v7  ;;  %v26_v7 = vld [vmem:[%s895_s4 + $0x28] sm:$0xff] }
   0x9   :  { %589 = vmatprep.mubr.msk.bf16.mxu1 %vm682_vm1, %v681_v0  ;;  %42 = vrot.lane.b32.xlu1 %v740_v6, %s684_s19 }
   0xa   :  { %v110_v10 = vld [vmem:[#allocation3 + $0x8] sm:$0xff] }
   0xb   :  { %v109_v9 = vld [vmem:[#allocation3] sm:$0xff]  ;;  %598 = vmatpush3.bf16.msra.mxu0 %v639_v33 }
   0xc   :  { %v626_v11 = vpack.i.bf16 %v110_v10, %v109_v9  ;;  %599 = vmatprep.subr.bf16.mxu0 %v681_v0 }
   0xe   :  { %627 = vrot.lane.b32.xlu0 %v626_v11, %s683_s0 }
   0xf   :  { %600 = vmatpush3.bf16.msra.mxu0 %v640_v34 }
  0x10   :  { %601 = vmatprep.subr.bf16.mxu0 %v681_v0 }
  0x13   :  { %602 = vmatpush3.bf16.msra.mxu0 %v641_v35 }
  0x14   :  { %603 = vmatprep.subr.bf16.mxu0 %v681_v0 }
  0x17   :  { %604 = vmatpush3.bf16.msra.mxu0 %v642_v36 }
  0x18   :  { %605 = vmatprep.subr.bf16.mxu0 %v681_v0 }
  0x1b   :  { %606 = vmatpush3.bf16.msra.mxu0 %v643_v37 }
  0x1c   :  { %607 = vmatprep.subr.bf16.mxu0 %v681_v0 }
  0x1f   :  { %608 = vmatpush3.bf16.msra.mxu0 %v644_v38 }
  0x76   :  { %v41_v44 = vpop.permute.xlu1 %40 }
  0x77   :  { %46 = vst.msk [vmem:[#allocation4] sm:$0xff] %vm35_vm2, %v41_v44 }
  0x7b   :  { %v43_v45 = vpop.permute.xlu1 %42 }
  0x7c   :  { %47 = vst.msk [vmem:[#allocation4 + $0x8] sm:$0xff] %vm35_vm2, %v43_v45 }
  0x7e   :  { %v111_v2 = vld [vmem:[#allocation4] sm:$0xff] }
  0x7f   :  { %v320_v3 = vmul.f32 %v319_v62, %v111_v2  ;;  %v300_v9 = vmul.f32 %v299_v8, %v111_v2 }
  0x80   :  { %v628_v22 = vpop.permute.xlu0 %627 }
  0x81   :  { %v630_v23 = vunpack.i.h.bf16 %v628_v22  ;;  %v629_v24 = vunpack.i.l.bf16 %v628_v22 }
  0x83   :  { %v112_v5 = vld [vmem:[#allocation4 + $0x8] sm:$0xff] }
  0x84   :  { %v321_v6 = vmul.f32 %v319_v62, %v112_v5  ;;  %v301_v11 = vmul.f32 %v299_v8, %v112_v5  ;;  %v23_v62 = vld [vmem:[%s895_s4 + $0x10] sm:$0xff] }
  0xc8   :  { %v98_v16 = vpop.f32.mrf.mxu1 }
  0xc9   :  { %v99_v17 = vadd.f32 %v98_v16, %v55_v15 }
  0xca   :  { %v585_v18 = vpop.f32.mrf.mxu1 }
  0xcb   :  { %105 = vst.msk [vmem:[#allocation2] sm:$0xff] %vm35_vm2, %v99_v17 }
  0xcc   :  { %v101_v19 = vpop.f32.mrf.mxu1 }
  0xcd   :  { %v102_v20 = vadd.f32 %v101_v19, %v55_v15 }
  0xce   :  { %v586_v21 = vpop.f32.mrf.mxu1 }
  0xcf   :  { %106 = vst.msk [vmem:[#allocation2 + $0x8] sm:$0xff] %vm35_vm2, %v102_v20 }
  0xd2   :  { %v107_v25 = vld [vmem:[#allocation2] sm:$0xff] }
  0xd3   :  { %v122_v27 = vsel %vm35_vm2, %v107_v25, %v629_v24 }
  0xd6   :  { %v108_v26 = vld [vmem:[#allocation2 + $0x8] sm:$0xff] }
  0xd7   :  { %v123_v28 = vsel %vm35_vm2, %v108_v26, %v630_v23 }
  0xd8   :  { %v124_v29 = vpack.c.bf16 %v123_v28, %v122_v27 }
  0xda   :  { %588 = vmatpush3.bf16.msra.mxu1 %v124_v29 }
  0xdb   :  { %613 = vmatprep.subr.bf16.mxu1 %v681_v0 }
  0xdd   :  { %590 = vmatmul.mubr.msk.bf16.vlgmr.msra.gmra.mxu1 %vm130_vm4, %v636_v30 }
  0xde   :  { %617 = vmatprep.mubr.msk.bf16.mxu1 %vm682_vm1, %v681_v0 }
 0x19d   :  { %v168_v39 = vpop.f32.mrf.mxu1 }
 0x19f   :  { %v591_v40 = vpop.f32.mrf.mxu1 }
 0x1a1   :  { %v171_v41 = vpop.f32.mrf.mxu1 }
 0x1a2   :  { %v631_v42 = vpack.i.bf16 %v171_v41, %v168_v39 }
 0x1a3   :  { %v592_v43 = vpop.f32.mrf.mxu1 }
 0x1a4   :  { %632 = vrot.lane.b32.xlu0 %v631_v42, %s685_s20 }
 0x216   :  { %v633_v46 = vpop.permute.xlu0 %632 }
 0x217   :  { %v635_v47 = vunpack.i.h.bf16 %v633_v46  ;;  %v634_v48 = vunpack.i.l.bf16 %v633_v46  ;;  %v378_v46 = vsub.s32 7, %v753_v13 }
 0x219   :  { %v184_v49 = vsel %vm183_vm5, %v122_v27, %v634_v48  ;;  %v185_v50 = vsel %vm183_vm5, %v123_v28, %v635_v47  ;;  %v379_v47 = vrot.slane %v720_v1, %v378_v46 }
 0x21a   :  { %v186_v51 = vpack.c.bf16 %v185_v50, %v184_v49 }
 0x21c   :  { %610 = vmatmul.mubr.bf16.vlgmr.msra.gmra.mxu0 %v186_v51 }
 0x2dc   :  { %v289_v55 = vpop.f32.mrf.mxu0 }
 0x2dd   :  { %v814_v56 = vadd.f32 %v289_v55, %v206_v54 }
 0x2de   :  { %v611_v57 = vpop.f32.mrf.mxu0 }
 0x2df   :  { %645 = vtanh.f32 %v814_v56  ;;  %v302_v10 = vadd.f32 %v300_v9, %v814_v56 }
 0x2e0   :  { %v292_v58 = vpop.f32.mrf.mxu0 }
 0x2e1   :  { %v817_v59 = vadd.f32 %v292_v58, %v206_v54  ;;  %v558_v12 = vmul.f32 -1.442695, %v302_v10 }
 0x2e2   :  { %v612_v60 = vpop.f32.mrf.mxu0 }
 0x2e3   :  { %647 = vtanh.f32 %v817_v59  ;;  %v303_v14 = vadd.f32 %v301_v11, %v817_v59 }
 0x2e4   :  { %649 = vpow2.f32 %v558_v12 }
 0x2e5   :  { %v559_v15 = vmul.f32 -1.442695, %v303_v14 }
 0x2e7   :  { %651 = vpow2.f32 %v559_v15 }
 0x2ec   :  { %v646_v63 = vpop.eup %645 }
 0x2ed   :  { %358 = vrot.lane.b32.xlu0 %v646_v63, %s685_s20 }
 0x2f0   :  { %v648_v4 = vpop.eup %647 }
 0x2f1   :  { %324 = vrot.lane.b32.xlu0 %v320_v3, %s683_s0  ;;  %360 = vrot.lane.b32.xlu1 %v648_v4, %s685_s20  ;;  %v650_v16 = vpop.eup %649 }
 0x2f2   :  { %v310_v17 = vadd.f32 1.0, %v650_v16 }
 0x2f4   :  { %v652_v18 = vpop.eup %651  ;;  %653 = vrcp.f32 %v310_v17 }
 0x2f5   :  { %326 = vrot.lane.b32.xlu1 %v321_v6, %s683_s0  ;;  %348 = vrot.lane.b32.xlu0 %v111_v2, %s683_s0  ;;  %v311_v19 = vadd.f32 1.0, %v652_v18  ;;  %v452_v2 = vpack.c.bf16 %v23_v62, %v811_v53  ;;  %v454_v53 = vpack.c.bf16 %v26_v7, %v26_v7 }
 0x2f7   :  { %655 = vrcp.f32 %v311_v19  ;;  %v464_v9 = vshrl.u32 %v452_v2, 16  ;;  %v479_v14 = vshll.u32 %v454_v53, 16 }
 0x2f9   :  { %350 = vrot.lane.b32.xlu1 %v112_v5, %s683_s0  ;;  %v466_v5 = vshll.u32 %v452_v2, 16  ;;  %v481_v16 = vrot.slane %v479_v14, 1 }
 0x2fb   :  { %v468_v10 = vrot.slane %v466_v5, 1 }
 0x2fd   :  { %v469_v18 = vor.u32 %v468_v10, %v464_v9 }
 0x301   :  { %v654_v20 = vpop.eup %653 }
 0x304   :  { %v656_v23 = vpop.eup %655 }
 0x35f   :  { %v359_v21 = vpop.permute.xlu0 %358 }
 0x360   :  { %v364_v22 = vmul.f32 %v654_v20, %v359_v21 }
 0x362   :  { %368 = vrot.lane.b32.xlu0 %v364_v22, %s683_s0 }
 0x363   :  { %v361_v24 = vpop.permute.xlu1 %360  ;;  %v325_v26 = vpop.permute.xlu0 %324 }
 0x364   :  { %v365_v25 = vmul.f32 %v656_v23, %v361_v24  ;;  %v330_v27 = vadd.f32 %v325_v26, %v814_v56 }
 0x366   :  { %370 = vrot.lane.b32.xlu1 %v365_v25, %s683_s0  ;;  %v560_v29 = vmul.f32 -1.442695, %v330_v27 }
 0x367   :  { %v327_v28 = vpop.permute.xlu1 %326  ;;  %v349_v37 = vpop.permute.xlu0 %348 }
 0x368   :  { %v331_v30 = vadd.f32 %v327_v28, %v817_v59  ;;  %657 = vpow2.f32 %v560_v29 }
 0x36a   :  { %v561_v31 = vmul.f32 -1.442695, %v331_v30 }
 0x36b   :  { %v351_v40 = vpop.permute.xlu1 %350 }
 0x36c   :  { %659 = vpow2.f32 %v561_v31 }
 0x375   :  { %v658_v32 = vpop.eup %657 }
 0x376   :  { %v338_v33 = vadd.f32 1.0, %v658_v32  ;;  %v457_v32 = vsub.s32 1, %v753_v13 }
 0x378   :  { %661 = vrcp.f32 %v338_v33  ;;  %v458_v33 = vrot.slane %v26_v7, %v457_v32 }
 0x379   :  { %v660_v34 = vpop.eup %659 }
 0x37a   :  { %v339_v35 = vadd.f32 1.0, %v660_v34 }
 0x37c   :  { %663 = vrcp.f32 %v339_v35 }
 0x385   :  { %v662_v36 = vpop.eup %661 }
 0x386   :  { %v354_v38 = vmul.f32 %v662_v36, %v349_v37 }
 0x389   :  { %v664_v39 = vpop.eup %663 }
 0x38a   :  { %v355_v43 = vmul.f32 %v664_v39, %v351_v40 }
 0x3d4   :  { %v369_v41 = vpop.permute.xlu0 %368 }
 0x3d5   :  { %v836_v42 = vadd.f32 %v369_v41, %v354_v38 }
 0x3d7   :  { %382 = vrot.lane.b32.xlu0 %v836_v42, %s684_s19  ;;  %665 = vtanh.f32 %v836_v42 }
 0x3d8   :  { %v371_v44 = vpop.permute.xlu1 %370 }
 0x3d9   :  { %v840_v45 = vadd.f32 %v371_v44, %v355_v43 }
 0x3db   :  { %384 = vrot.lane.b32.xlu1 %v840_v45, %s684_s19  ;;  %667 = vtanh.f32 %v840_v45 }
 0x3e4   :  { %v666_v52 = vpop.eup %665 }
 0x3e8   :  { %v668_v54 = vpop.eup %667 }
 0x449   :  { %v383_v48 = vpop.permute.xlu0 %382 }
 0x44a   :  { %v388_v49 = vmul.f32 %v383_v48, %v379_v47  ;;  %436 = vst.msk [vmem:[#allocation4] sm:$0xff] %vm35_vm2, %v383_v48 }
 0x44c   :  { %392 = vrot.lane.b32.xlu0 %v388_v49, %s684_s19 }
 0x44d   :  { %v385_v50 = vpop.permute.xlu1 %384 }
 0x44e   :  { %v389_v51 = vmul.f32 %v385_v50, %v379_v47  ;;  %437 = vst.msk [vmem:[#allocation4 + $0x8] sm:$0xff] %vm35_vm2, %v385_v50 }
 0x450   :  { %416 = vrot.lane.b32.xlu0 %v666_v52, %s685_s20  ;;  %394 = vrot.lane.b32.xlu1 %v389_v51, %s684_s19 }
 0x454   :  { %418 = vrot.lane.b32.xlu1 %v668_v54, %s685_s20 }
 0x4be   :  { %v393_v55 = vpop.permute.xlu0 %392 }
 0x4bf   :  { %v398_v1 = vadd.f32 %v393_v55, %v814_v56  ;;  %v24_v56 = vld [vmem:[%s895_s4 + $0x18] sm:$0xff] }
 0x4c1   :  { %v562_v57 = vmul.f32 -1.442695, %v398_v1 }
 0x4c2   :  { %v395_v58 = vpop.permute.xlu1 %394  ;;  %v417_v21 = vpop.permute.xlu0 %416 }
 0x4c3   :  { %669 = vpow2.f32 %v562_v57  ;;  %v399_v60 = vadd.f32 %v395_v58, %v817_v59  ;;  %v25_v59 = vld [vmem:[%s895_s4 + $0x20] sm:$0xff] }
 0x4c4   :  { %v453_v8 = vpack.c.bf16 %v25_v59, %v24_v56 }
 0x4c5   :  { %v563_v61 = vmul.f32 -1.442695, %v399_v60 }
 0x4c6   :  { %v471_v11 = vshll.u32 %v453_v8, 16  ;;  %v475_v12 = vshrl.u32 %v453_v8, 16  ;;  %v419_v25 = vpop.permute.xlu1 %418 }
 0x4c7   :  { %671 = vpow2.f32 %v563_v61 }
 0x4c8   :  { %v473_v15 = vrot.slane %v471_v11, 1 }
 0x4ca   :  { %v477_v17 = vor.u32 %v475_v12, %v473_v15  ;;  %v474_v23 = vsel %vm462_vm6, %v469_v18, %v473_v15 }
 0x4cc   :  { %v482_v19 = vsel %vm462_vm6, %v477_v17, %v481_v16 }
 0x4cd   :  { %614 = vmatpush3.bf16.msra.mxu1 %v482_v19 }
 0x4ce   :  { %615 = vmatprep.subr.bf16.mxu1 %v681_v0 }
 0x4d0   :  { %v670_v63 = vpop.eup %669 }
 0x4d1   :  { %v406_v3 = vadd.f32 1.0, %v670_v63  ;;  %616 = vmatpush3.bf16.msra.mxu1 %v474_v23 }
 0x4d3   :  { %673 = vrcp.f32 %v406_v3 }
 0x4d4   :  { %v672_v4 = vpop.eup %671 }
 0x4d5   :  { %v407_v6 = vadd.f32 1.0, %v672_v4 }
 0x4d7   :  { %675 = vrcp.f32 %v407_v6 }
 0x4e0   :  { %v674_v20 = vpop.eup %673 }
 0x4e1   :  { %v422_v22 = vmul.f32 %v674_v20, %v417_v21 }
 0x4e3   :  { %428 = vrot.lane.b32.xlu1 %v422_v22, %s683_s0  ;;  %677 = vtanh.f32 %v422_v22 }
 0x4e4   :  { %v676_v24 = vpop.eup %675 }
 0x4e5   :  { %v423_v26 = vmul.f32 %v676_v24, %v419_v25 }
 0x4e7   :  { %679 = vtanh.f32 %v423_v26 }
 0x4f0   :  { %v678_v27 = vpop.eup %677 }
 0x4f4   :  { %v680_v28 = vpop.eup %679 }
 0x4f5   :  { %v451_v29 = vpack.c.bf16 %v680_v28, %v678_v27 }
 0x4f7   :  { %460 = vrot.lane.b32.xlu0 %v451_v29, %s683_s0 }
 0x4fb   :  { %430 = vrot.lane.b32.xlu0 %v423_v26, %s683_s0 }
 0x555   :  { %v429_v30 = vpop.permute.xlu1 %428 }
 0x556   :  { %434 = vst.msk [vmem:[#allocation3] sm:$0xff] %vm35_vm2, %v429_v30  ;;  %v537_v40 = vsel %vm35_vm2, %v429_v30, %v836_v42 }
 0x569   :  { %v461_v0 = vpop.permute.xlu0 %460 }
 0x56a   :  { %618 = vmatmul.mubr.msk.bf16.vlgmr.msra.gmra.mxu1 %vm35_vm2, %v461_v0 }
 0x56d   :  { %v431_v31 = vpop.permute.xlu0 %430 }
 0x56e   :  { %435 = vst.msk [vmem:[#allocation3 + $0x8] sm:$0xff] %vm35_vm2, %v431_v31  ;;  %v538_v43 = vsel %vm35_vm2, %v431_v31, %v840_v45 }
 0x62a   :  { %v522_v34 = vpop.f32.mrf.mxu1 }
 0x62b   :  { %v523_v35 = vadd.f32 %v522_v34, %v458_v33 }
 0x62c   :  { %v619_v36 = vpop.f32.mrf.mxu1 }
 0x62d   :  { %531 = vrot.lane.b32.xlu1 %v523_v35, %s685_s20 }
 0x62e   :  { %v525_v37 = vpop.f32.mrf.mxu1 }
 0x62f   :  { %v526_v38 = vadd.f32 %v525_v37, %v458_v33 }
 0x630   :  { %v620_v39 = vpop.f32.mrf.mxu1 }
 0x631   :  { %440 = vrot.lane.b32.xlu1 %v678_v27, %s683_s0  ;;  %533 = vrot.lane.b32.xlu0 %v526_v38, %s685_s20 }
 0x635   :  { %442 = vrot.lane.b32.xlu0 %v680_v28, %s683_s0 }
 0x69f   :  { %v532_v41 = vpop.permute.xlu1 %531 }
 0x6a0   :  { %v539_v13 = vsel %vm183_vm5, %v537_v40, %v532_v41 }
 0x6a1   :  { %541 = vst [vmem:[%s900_s5] sm:$0xff] %v539_v13 }
 0x6a3   :  { %v441_v44 = vpop.permute.xlu1 %440  ;;  %v534_v46 = vpop.permute.xlu0 %533 }
 0x6a4   :  { %446 = vst.msk [vmem:[#allocation2] sm:$0xff] %vm35_vm2, %v441_v44  ;;  %v540_v47 = vsel %vm183_vm5, %v538_v43, %v534_v46 }
 0x6a5   :  { %542 = vst [vmem:[%s900_s5 + $0x8] sm:$0xff] %v540_v47 }
 0x6a7   :  { %v443_v42 = vpop.permute.xlu0 %442 }
 0x6a8   :  { %447 = vst.msk [vmem:[#allocation2 + $0x8] sm:$0xff] %vm35_vm2, %v443_v42 }

</bundles_post_ra>
